<compile_context>
chip_gen: v7x
topology: tpu7x:2x2x1
jax: 0.10.0
libtpu: 0.0.40
codegen_flags: <defaults>
</compile_context>

<pallas_src>
import functools

import jax
import jax.numpy as jnp
from jax.experimental import pallas as pl
from jax.experimental.pallas import tpu as pltpu


def _round_up(v, m):
    return ((v + m - 1) // m) * m


def _quant_linear_kernel(scales_ref, x_ref, w_ref, b_ref, o_ref, acc_ref):
    # scales_ref : SMEM (2,) fp32  -> [1/prev_act_scaling_factor, bias_scaling_factor]
    # x_ref      : (tm, tk) fp32   activation tile
    # w_ref      : (tk, tn) bf16   quantized weight tile (integer-valued), pre-transposed
    # b_ref      : (1,  tn) fp32   quantized bias tile (integer-valued)
    # o_ref      : (tm, tn) fp32   output tile (resident across the k axis)
    # acc_ref    : (tm, tn) fp32   VMEM accumulator scratch
    k = pl.program_id(2)

    @pl.when(k == 0)
    def _():
        acc_ref[...] = jnp.zeros_like(acc_ref)

    inv_act_scale = scales_ref[0]
    x_int = x_ref[...] * inv_act_scale                       # x / prev_act_scaling_factor
    acc_ref[...] += jnp.dot(x_int, w_ref[...].astype(jnp.float32),
                            preferred_element_type=jnp.float32)

    @pl.when(k == pl.num_programs(2) - 1)
    def _():
        out_scale = scales_ref[1]                            # = correct_output_scale
        o_ref[...] = jnp.round(acc_ref[...] + b_ref[...]) * out_scale


def quantize_quant_linear_params(weight, bias, prev_act_scaling_factor,
                                 weight_bit=4, bias_bit=32):
    """Per-tensor symmetric quantization of weight/bias (plain JAX).

    This is the parameter-setup path of QuantLinear.forward. It is hoisted out
    of the hot path so a caller can run it once at load time and reuse the
    returned tensors for every forward call.
    """
    n = 2 ** (weight_bit - 1) - 1
    w_min = jnp.min(weight)
    w_max = jnp.max(weight)
    fc_scaling_factor = (jnp.maximum(jnp.maximum(jnp.abs(w_min), jnp.abs(w_max)),
                                     1e-8) / n).reshape(1)                      # (1,)
    weight_integer = jnp.clip(jnp.round(weight / fc_scaling_factor[0]), -n - 1, n)

    act_s = prev_act_scaling_factor.reshape(-1)[0].astype(jnp.float32)
    bias_scaling_factor = fc_scaling_factor[0] * act_s                          # scalar
    nb = 2 ** (bias_bit - 1) - 1
    bias_integer = jnp.clip(jnp.round(bias / bias_scaling_factor), -nb - 1, nb)

    # int4-range integers (-8..7) are exact in bf16 -> halve weight HBM/VMEM traffic.
    w_int_t = weight_integer.T.astype(jnp.bfloat16)                 # [K, N]
    # bias_bit=32 integers can exceed bf16's mantissa -> keep bias in fp32 (it is tiny).
    b_int = bias_integer.reshape(1, -1).astype(jnp.float32)         # [1, N]
    scales = jnp.stack([1.0 / act_s, bias_scaling_factor]).astype(jnp.float32)  # (2,)
    return w_int_t, b_int, scales, fc_scaling_factor


@functools.partial(jax.jit, static_argnames=("tm", "tn", "tk"))
def quant_linear_apply(x, w_int_t, b_int, scales, *, tm=256, tn=512, tk=1024):
    """Hot path: quantized linear. x: [B, K] fp32; w_int_t: [K, N] bf16 (integer-
    valued); b_int: [1, N] fp32 (integer-valued); scales: (2,) fp32."""
    B, K = x.shape
    K2, N = w_int_t.shape
    assert K == K2, "in_features mismatch"

    # Clamp tiles to the (padded) problem size; keep (8, 128) alignment.
    tm = min(tm, _round_up(B, 8))
    tn = min(tn, _round_up(N, 128))
    tk = min(tk, _round_up(K, 128))

    Bp, Kp, Np = _round_up(B, tm), _round_up(K, tk), _round_up(N, tn)
    x_p = jnp.pad(x, ((0, Bp - B), (0, Kp - K))) if (Bp, Kp) != (B, K) else x
    w_p = jnp.pad(w_int_t, ((0, Kp - K), (0, Np - N))) if (Kp, Np) != (K, N) else w_int_t
    b_p = jnp.pad(b_int, ((0, 0), (0, Np - N))) if Np != N else b_int

    grid = (Bp // tm, Np // tn, Kp // tk)

    out = pl.pallas_call(
        _quant_linear_kernel,
        out_shape=jax.ShapeDtypeStruct((Bp, Np), jnp.float32),
        grid_spec=pltpu.PrefetchScalarGridSpec(
            num_scalar_prefetch=1,                              # scales -> SMEM
            grid=grid,
            in_specs=[
                pl.BlockSpec((tm, tk), lambda i, j, k, s: (i, k)),   # x tile
                pl.BlockSpec((tk, tn), lambda i, j, k, s: (k, j)),   # weight tile (bf16)
                pl.BlockSpec((1, tn), lambda i, j, k, s: (0, j)),    # bias tile
            ],
            out_specs=pl.BlockSpec((tm, tn), lambda i, j, k, s: (i, j)),
            scratch_shapes=[pltpu.VMEM((tm, tn), jnp.float32)],      # fp32 accumulator
        ),
        compiler_params=pltpu.CompilerParams(
            dimension_semantics=("parallel", "parallel", "arbitrary"),
            vmem_limit_bytes=32 * 1024 * 1024,   # fits scoped VMEM on v5e/v6e/v7x
        ),
    )(scales, x_p, w_p, b_p)

    return out[:B, :N]


def quant_linear_forward(x, weight, bias, prev_act_scaling_factor,
                         weight_bit=4, bias_bit=32, tm=256, tn=512, tk=1024):
    """Full QuantLinear.forward: quantize params (cacheable) + Pallas matmul.
    x: [B, K] fp32; weight: [N, K] fp32 (torch Linear layout); bias: [N] fp32.
    Returns (output [B, N] fp32, fc_scaling_factor shape (1,))."""
    w_int_t, b_int, scales, fc_scaling_factor = quantize_quant_linear_params(
        weight, bias, prev_act_scaling_factor, weight_bit=weight_bit, bias_bit=bias_bit)
    out = quant_linear_apply(x, w_int_t, b_int, scales, tm=tm, tn=tn, tk=tk)
    return out, fc_scaling_factor


if __name__ == "__main__":
    key = jax.random.PRNGKey(0)
    kx, kw, kb = jax.random.split(key, 3)

    # Small, deliberately ragged shapes to exercise padding + the K-reduction loop.
    B, K, N = 12, 384, 192          # batch, in_features, out_features
    weight_bit, bias_bit = 4, 32

    x = jax.random.normal(kx, (B, K), dtype=jnp.float32)
    weight = jax.random.normal(kw, (N, K), dtype=jnp.float32) * 0.1
    bias = jax.random.normal(kb, (N,), dtype=jnp.float32) * 0.1
    prev_act_scaling_factor = jnp.array([0.05], dtype=jnp.float32)

    # Small tiles here so the 3-D grid (2, 2, 3) and accumulator path are exercised;
    # production shapes should use the defaults (tm=256, tn=512, tk=1024).
    out, fc_scale = quant_linear_forward(x, weight, bias, prev_act_scaling_factor,
                                         weight_bit=weight_bit, bias_bit=bias_bit,
                                         tm=8, tn=128, tk=128)
    jax.block_until_ready(out)

    # ---- pure-JAX reference check (mirrors the PyTorch forward exactly) ----
    n = 2 ** (weight_bit - 1) - 1
    s_w = jnp.maximum(jnp.maximum(jnp.abs(weight.min()), jnp.abs(weight.max())), 1e-8) / n
    w_int = jnp.clip(jnp.round(weight / s_w), -n - 1, n)
    s_b = s_w * prev_act_scaling_factor[0]
    nb = 2 ** (bias_bit - 1) - 1
    b_int = jnp.clip(jnp.round(bias / s_b), -nb - 1, nb)
    x_int = x / prev_act_scaling_factor.reshape(1, -1)
    ref = jnp.round(x_int @ w_int.T + b_int) * s_b

    assert out.shape == (B, N)
    assert jnp.allclose(fc_scale, s_w.reshape(1), atol=1e-7), "scale mismatch"
    assert jnp.allclose(out, ref, atol=2e-2), "mismatch vs reference"

    print("KERNEL_OK")
</pallas_src>

<mosaic_0001>
module attributes {stable_mosaic.version = 11 : i64} {
  func.func @_quant_linear_kernel(%arg0: i32, %arg1: i32, %arg2: i32, %arg3: memref<2xf32, #tpu.memory_space<smem>>, %arg4: memref<8x128xf32, #tpu.memory_space<vmem>>, %arg5: memref<128x128xbf16, #tpu.memory_space<vmem>>, %arg6: memref<1x128xf32, #tpu.memory_space<vmem>>, %arg7: memref<8x128xf32, #tpu.memory_space<vmem>>, %arg8: memref<8x128xf32, #tpu.memory_space<vmem>>) attributes {dimension_semantics = [#tpu.dimension_semantics<parallel>, #tpu.dimension_semantics<parallel>, #tpu.dimension_semantics<arbitrary>], iteration_bounds = array<i64: 2, 2, 3>, scalar_prefetch = 1 : i64, scratch_operands = 1 : i64, tpu.core_type = #tpu.core_type<tc>, window_params = [{transform_indices = @transform_0, window_bounds = array<i64: 8, 128>}, {transform_indices = @transform_1, window_bounds = array<i64: 128, 128>}, {transform_indices = @transform_2, window_bounds = array<i64: 1, 128>}, {transform_indices = @transform_3, window_bounds = array<i64: 8, 128>}]} {
    %c0_i32 = arith.constant 0 : i32
    %0 = arith.cmpi eq, %arg2, %c0_i32 : i32
    %1 = arith.extui %0 : i1 to i32
    %c0_i32_0 = arith.constant 0 : i32
    %2 = arith.cmpi ne, %1, %c0_i32_0 : i32
    scf.if %2 {
      %cst_10 = arith.constant 0.000000e+00 : f32
      %16 = vector.broadcast %cst_10 : f32 to vector<8x128xf32>
      %c0_11 = arith.constant 0 : index
      %c0_12 = arith.constant 0 : index
      %17 = vector.load %arg8[%c0_11, %c0_12] : memref<8x128xf32, #tpu.memory_space<vmem>>, vector<8x128xf32>
      tpu.vector_store %arg8[%c0_11, %c0_12], %16 {strides = array<i32>} : memref<8x128xf32, #tpu.memory_space<vmem>>, vector<8x128xf32>,
    } else {
    }
    %c0 = arith.constant 0 : index
    %3 = memref.load %arg3[%c0] : memref<2xf32, #tpu.memory_space<smem>>
    %c0_1 = arith.constant 0 : index
    %c0_2 = arith.constant 0 : index
    %4 = vector.load %arg4[%c0_1, %c0_2] : memref<8x128xf32, #tpu.memory_space<vmem>>, vector<8x128xf32>
    %5 = vector.broadcast %3 : f32 to vector<8x128xf32>
    %6 = arith.mulf %4, %5 : vector<8x128xf32>
    %c0_3 = arith.constant 0 : index
    %c0_4 = arith.constant 0 : index
    %7 = vector.load %arg8[%c0_3, %c0_4] : memref<8x128xf32, #tpu.memory_space<vmem>>, vector<8x128xf32>
    %c0_5 = arith.constant 0 : index
    %c0_6 = arith.constant 0 : index
    %8 = vector.load %arg5[%c0_5, %c0_6] : memref<128x128xbf16, #tpu.memory_space<vmem>>, vector<128x128xbf16>
    %9 = arith.extf %8 : vector<128x128xbf16> to vector<128x128xf32>
    %cst = arith.constant dense<0.000000e+00> : vector<8x128xf32>
    %10 = tpu.matmul %6, %9, %cst {dimension_numbers = #tpu.dot_dimension_numbers<[1], [0], [0], [1], [0, 0, 1, 1], [], []>} : vector<8x128xf32>, vector<128x128xf32>, vector<8x128xf32> -> vector<8x128xf32>
    %11 = arith.addf %7, %10 : vector<8x128xf32>
    %c0_7 = arith.constant 0 : index
    %c0_8 = arith.constant 0 : index
    %12 = vector.load %arg8[%c0_7, %c0_8] : memref<8x128xf32, #tpu.memory_space<vmem>>, vector<8x128xf32>
    tpu.vector_store %arg8[%c0_7, %c0_8], %11 {strides = array<i32>} : memref<8x128xf32, #tpu.memory_space<vmem>>, vector<8x128xf32>,
    %c2_i32 = arith.constant 2 : i32
    %13 = arith.cmpi eq, %arg2, %c2_i32 : i32
    %14 = arith.extui %13 : i1 to i32
    %c0_i32_9 = arith.constant 0 : i32
    %15 = arith.cmpi ne, %14, %c0_i32_9 : i32
    scf.if %15 {
      %c1 = arith.constant 1 : index
      %16 = memref.load %arg3[%c1] : memref<2xf32, #tpu.memory_space<smem>>
      %c0_10 = arith.constant 0 : index
      %c0_11 = arith.constant 0 : index
      %17 = vector.load %arg8[%c0_10, %c0_11] : memref<8x128xf32, #tpu.memory_space<vmem>>, vector<8x128xf32>
      %c0_12 = arith.constant 0 : index
      %c0_13 = arith.constant 0 : index
      %18 = vector.load %arg6[%c0_12, %c0_13] : memref<1x128xf32, #tpu.memory_space<vmem>>, vector<1x128xf32>
      %19 = vector.broadcast %18 : vector<1x128xf32> to vector<8x128xf32>
      %20 = arith.addf %17, %19 : vector<8x128xf32>
      %21 = math.roundeven %20 : vector<8x128xf32>
      %22 = vector.broadcast %16 : f32 to vector<8x128xf32>
      %23 = arith.mulf %21, %22 : vector<8x128xf32>
      %c0_14 = arith.constant 0 : index
      %c0_15 = arith.constant 0 : index
      %24 = vector.load %arg7[%c0_14, %c0_15] : memref<8x128xf32, #tpu.memory_space<vmem>>, vector<8x128xf32>
      tpu.vector_store %arg7[%c0_14, %c0_15], %23 {strides = array<i32>} : memref<8x128xf32, #tpu.memory_space<vmem>>, vector<8x128xf32>,
    } else {
    }
    return
  }
  func.func @transform_0(%arg0: i32, %arg1: i32, %arg2: i32, %arg3: memref<2xf32, #tpu.memory_space<smem>>) -> (i32, i32) {
    %c0_i32 = arith.constant 0 : i32
    return %arg0, %arg2 : i32, i32
  }
  func.func @transform_1(%arg0: i32, %arg1: i32, %arg2: i32, %arg3: memref<2xf32, #tpu.memory_space<smem>>) -> (i32, i32) {
    %c0_i32 = arith.constant 0 : i32
    return %arg2, %arg1 : i32, i32
  }
  func.func @transform_2(%arg0: i32, %arg1: i32, %arg2: i32, %arg3: memref<2xf32, #tpu.memory_space<smem>>) -> (i32, i32) {
    %c0_i32 = arith.constant 0 : i32
    %c0_i32_0 = arith.constant 0 : i32
    return %c0_i32, %arg1 : i32, i32
  }
  func.func @transform_3(%arg0: i32, %arg1: i32, %arg2: i32, %arg3: memref<2xf32, #tpu.memory_space<smem>>) -> (i32, i32) {
    %c0_i32 = arith.constant 0 : i32
    return %arg0, %arg1 : i32, i32
  }
}

</mosaic_0001>

<bundles_post_ra>
// kernel: quant_linear_apply.1
= control target key start
LH: loop header
LB: loop body
LE: loop exit
PB: predicated region body
PF: predicated region fallthrough
CT: control target
= control target key end

     0   :  { %s1279_s0 = inlined_call_operand.vmem [shape: f32[2], index: 0, kind: input, shape index: {}]   ;;  %s1280_s1 = inlined_call_operand.vmem [shape: f32[16,384], index: 1, kind: input, shape index: {}]   ;;  %s1281_s2 = inlined_call_operand.vmem [shape: bf16[384,256], index: 2, kind: input, shape index: {}]   ;;  %s1282_s3 = inlined_call_operand.vmem [shape: f32[1,256], index: 3, kind: input, shape index: {}]   ;;  %s1283_s4 = inlined_call_operand.hbm [shape: f32[16,256], index: 4, kind: output, shape index: {}]  }
   0x1   :  { %1291 = sst [smem:[#allocation16_spill]] %s1281_s2  ;;  %s9_s17 = sshll.u32 %s1279_s0, 4  ;;  %s10_s17 = int_to_ptr.vmem [resolvable:$true] %s9_s17 }
   0x2   :  { %s857_s18 = scalar_lea.vmem %s10_s17, 16  ;;  %p862_p1 = scmp.lt.s32.totalorder %s10_s17, %s10_s17 }
   0x3   :  { %p858_p0 = scmp.ne.s32.totalorder %s10_s17, %s857_s18  ;;  %p863_p2 = scmp.lt.s32.totalorder %s857_s18, %s857_s18 }
   0x5   :  { %p864_p3 = por %p863_p2, %p862_p1 }
   0x7   :  { %p865_p4 = pnand %p864_p3, %p858_p0 }
   0x9   :  { %868 = shalt.err (!%p865_p4)  }
   0xa   :  { %s999_s19 = smov [#allocation4]  }
   0xb   :  { %12 = dma.vmem_to_smem %s10_s17, 16, %s999_s19, [#allocation3] }
   0xc   :  { %945 = dma.done.wait [#allocation3], 16 }
   0xd   :  { %946 = vsyncadd [#allocation3], 4294967280 }
   0xe   :  { %14 = sfence }
   0xf   :  { %15 = vsyncpa [#allocation7], 0 }
  0x10   :  { %17 = vsyncpa [#allocation7 + $0x1], 0  ;;  %s1033_s20 = smov 0   ;;  %s1035_s21 = smov 0  }
  0x11   :  { %s1037_s0 = smov 0   ;;  %s1039_s22 = smov 0  }
  0x12   :  { %s1041_s23 = smov 0   ;;  %s1043_s24 = smov 0  }
  0x13   :  { %s1045_s25 = smov 0   ;;  %s1047_s26 = smov 0  }
  0x14   :  { %s1049_s27 = smov 0   ;;  %s1051_s28 = smov 0  }
  0x15   :  { %s1053_s29 = smov 0   ;;  %s1055_s30 = smov 0  }
  0x16 LB: > { %1292 = sst [smem:[#allocation10_spill]] %s985_s27  ;;  %s610_s5 = sadd.s32 4294967295, %s997_s30   ;;  %s997_s30 = sphi %s1055_s30, %s23_s30   ;;  %s993_s29 = sphi %s1053_s29, %s1308_s29   ;;  %s989_s28 = sphi %s1051_s28, %s1307_s28   ;;  %s985_s27 = sphi %s1049_s27, %s1306_s27   ;;  %s981_s26 = sphi %s1047_s26, %s1305_s26   ;;  %s977_s25 = sphi %s1045_s25, %s1304_s25   ;;  %s973_s24 = sphi %s1043_s24, %s1303_s24   ;;  %s969_s23 = sphi %s1041_s23, %s1313_s23   ;;  %s965_s22 = sphi %s1039_s22, %s1312_s22   ;;  %s961_s0 = sphi %s1037_s0, %s1311_s0   ;;  %s957_s21 = sphi %s1035_s21, %s1310_s21   ;;  %s953_s20 = sphi %s1033_s20, %s1309_s20  }
  0x17   : > { %1293 = sst [smem:[#allocation11_spill]] %s989_s28  ;;  %s611_s6 = sadd.s32 4294967294, %s997_s30  }
  0x18   : > { %1294 = sst [smem:[#allocation12_spill]] %s993_s29  ;;  %s35_s7 = sadd.s32 1, %s985_s27 }
  0x19   : > { %s38_s8 = sadd.s32 1, %s989_s28  ;;  %p36_p5 = scmp.ge.s32.totalorder %s35_s7, 3 }
  0x1a   : > { %s42_s9 = sadd.s32 1, %s993_s29  ;;  %s79_s10 = sadd.s32 1, %s969_s23 }
  0x1b   : > { %p86_p6 = scmp.ne.s32.totalorder %s969_s23, %s965_s22  ;;  %s1315_s7 = smov (%p36_p5, %s35_s7), 0 }
  0x1c   : > { %1295 = sst [smem:[#allocation13_spill]] %s1315_s7  ;;  %s1317_s8 = smov (!%p36_p5, %s38_s8), %s989_s28 }
  0x1d   : > { %s74_s11 = ssub.s32 %s985_s27, %s1315_s7  ;;  %p87_p7 = scmp.eq.s32.totalorder %s997_s30, 0 }
  0x1e   : > { %p40_p8 = scmp.ge.s32.totalorder %s1317_s8, 2  ;;  %s133_s12 = sadd.s32 1, %s961_s0 }
  0x1f   : > { %p1108_p9 = por %p87_p7, %p86_p6  ;;  %p143_p10 = scmp.ne.s32.totalorder %s961_s0, %s957_s21 }
  0x20   : > { %s1319_s8 = smov (%p40_p8, %s1317_s8), 0  ;;  %s1321_s9 = smov (!%p40_p8, %s42_s9), %s993_s29 }
  0x21   : > { %1297 = sst [smem:[#allocation14_spill]] %s1319_s8  ;;  %s75_s14 = ssub.s32 %s989_s28, %s1319_s8 }
  0x22   : > { %p144_p11 = scmp.eq.s32.totalorder %s610_s5, 11  ;;  %p44_p12 = scmp.ge.s32.totalorder %s1321_s9, 2 }
  0x23   : > { %s76_s15 = sor.u32 %s75_s14, %s74_s11  ;;  %p149_p1 = scmp.ne.s32.totalorder %s957_s21, %s953_s20 }
  0x24   : > { %p77_p13 = scmp.eq.s32.totalorder %s76_s15, 0  ;;  %p1119_p0 = por %p144_p11, %p143_p10 }
  0x25   : > { %s1323_s9 = smov (%p44_p12, %s1321_s9), 0  ;;  %p150_p2 = scmp.eq.s32.totalorder %s611_s6, 11 }
  0x26   : > { %1299 = sst [smem:[#allocation15_spill]] %s1323_s9  ;;  %s128_s18 = ssub.s32 %s993_s29, %s1323_s9 }
  0x27   : > { %s1126_s17 = scalar_select %p77_p13, %s969_s23, %s79_s10  }
  0x28   : > { %s130_s19 = sor.u32 %s128_s18, %s75_s14  ;;  %p1132_p4 = por %p150_p2, %p149_p1 }
  0x29   : > { %p131_p3 = scmp.eq.s32.totalorder %s130_s19, 0  ;;  %p613_p5 = scmp.ge.s32.totalorder %s997_s30, 12 }
  0x2b   : > { %s1137_s5 = scalar_select %p131_p3, %s961_s0, %s133_s12  }
  0x2c   : > { %166 = sbr.rel (%p613_p5) target bundleno = 71 (0x47), region = 16 }
  0x33   : > { %180 = sbr.rel (!%p1108_p9) target bundleno = 71 (0x47), region = 24  ;;  %s182_s10 = sand.u32 (%p1108_p9), 1, %s969_s23  }
  0x34   : > { %s631_s11 = sshll.u32 (%p1108_p9), %s985_s27, 5  ;;  %s614_s14 = sshll.u32 (%p1108_p9), %s182_s10, 6 }
  0x35   : > { %s187_s6 = sadd.s32 (%p1108_p9), %s989_s28, %s631_s11  ;;  %s1301_s2 = sld [smem:[#allocation16_spill]] (%p1108_p9) }
  0x36   : > { %s617_s15 = sshll.u32 (%p1108_p9), %s187_s6, 2  ;;  %s184_s12 = scalar_lea.vmem (%p1108_p9), [#allocation5], %s614_s14 }
  0x3b   : > { %s1148_s9 = scalar_lea.vmem %s1301_s2, %s617_s15 }
  0x3c   : > { %v205_v0 = vld [vmem:[%s1148_s9] sm:$0xf]  ;;  %v207_v1 = vld [vmem:[%s1148_s9 + $0x8] sm:$0xf]  ;;  %v209_v2 = vld [vmem:[%s1148_s9 + $0x10] sm:$0xf] }
  0x3d   : > { %206 = vst [vmem:[%s184_s12] sm:$0xf] %v205_v0  ;;  %208 = vst [vmem:[%s184_s12 + $0x4] sm:$0xf] %v207_v1  ;;  %v211_v3 = vld [vmem:[%s1148_s9 + $0x18] sm:$0xf] }
  0x3e   : > { %210 = vst [vmem:[%s184_s12 + $0x8] sm:$0xf] %v209_v2  ;;  %v213_v4 = vld [vmem:[%s1148_s9 + $0x20] sm:$0xf]  ;;  %v215_v5 = vld [vmem:[%s1148_s9 + $0x28] sm:$0xf] }
  0x3f   : > { %212 = vst [vmem:[%s184_s12 + $0xc] sm:$0xf] %v211_v3  ;;  %214 = vst [vmem:[%s184_s12 + $0x10] sm:$0xf] %v213_v4  ;;  %v217_v6 = vld [vmem:[%s1148_s9 + $0x30] sm:$0xf] }
  0x40   : > { %216 = vst [vmem:[%s184_s12 + $0x14] sm:$0xf] %v215_v5  ;;  %v219_v7 = vld [vmem:[%s1148_s9 + $0x38] sm:$0xf]  ;;  %v221_v8 = vld [vmem:[%s1148_s9 + $0x40] sm:$0xf] }
  0x41   : > { %218 = vst [vmem:[%s184_s12 + $0x18] sm:$0xf] %v217_v6  ;;  %220 = vst [vmem:[%s184_s12 + $0x1c] sm:$0xf] %v219_v7  ;;  %v223_v9 = vld [vmem:[%s1148_s9 + $0x48] sm:$0xf] }
  0x42   : > { %222 = vst [vmem:[%s184_s12 + $0x20] sm:$0xf] %v221_v8  ;;  %v225_v10 = vld [vmem:[%s1148_s9 + $0x50] sm:$0xf]  ;;  %v227_v11 = vld [vmem:[%s1148_s9 + $0x58] sm:$0xf] }
  0x43   : > { %224 = vst [vmem:[%s184_s12 + $0x24] sm:$0xf] %v223_v9  ;;  %226 = vst [vmem:[%s184_s12 + $0x28] sm:$0xf] %v225_v10  ;;  %v229_v12 = vld [vmem:[%s1148_s9 + $0x60] sm:$0xf] }
  0x44   : > { %228 = vst [vmem:[%s184_s12 + $0x2c] sm:$0xf] %v227_v11  ;;  %v231_v13 = vld [vmem:[%s1148_s9 + $0x68] sm:$0xf]  ;;  %v233_v14 = vld [vmem:[%s1148_s9 + $0x70] sm:$0xf] }
  0x45   : > { %230 = vst [vmem:[%s184_s12 + $0x30] sm:$0xf] %v229_v12  ;;  %232 = vst [vmem:[%s184_s12 + $0x34] sm:$0xf] %v231_v13  ;;  %v235_v15 = vld [vmem:[%s1148_s9 + $0x78] sm:$0xf] }
  0x46   : > { %234 = vst [vmem:[%s184_s12 + $0x38] sm:$0xf] %v233_v14  ;;  %236 = vst [vmem:[%s184_s12 + $0x3c] sm:$0xf] %v235_v15 }
  0x47 PF: > { %p618_p6 = scmp.ge.s32.totalorder %s997_s30, 1  ;;  %p296_p7 = scmp.lt.s32.totalorder %s997_s30, 13 }
  0x49   : > { %p297_p8 = pnand %p618_p6, %p296_p7 }
  0x4a   : > { %s303_s13 = sand.u32 (!%p297_p8), 1, %s965_s22   ;;  %s1288_s9 = sand.u32 (!%p297_p8), 1, %s957_s21  }
  0x4b   : > { %300 = sbr.rel (%p297_p8) target bundleno = 381 (0x17d), region = 69  ;;  %s619_s10 = sshll.u32 (!%p297_p8), %s303_s13, 6 }
  0x4c   : > { %s1172_s11 = sshll.u32 (!%p297_p8), %s1288_s9, 3  ;;  %p337_p9 = scmp.lt.s32.totalorder (!%p297_p8), %s981_s26, 1 }
  0x4d   : > { %p339_p10 = scmp.lt.s32.totalorder (!%p297_p8), %s973_s24, 2  ;;  %p346_p11 = scmp.lt.s32.totalorder (!%p297_p8), %s977_s25, 1 }
  0x4e   : > { %s1191_s28 = scalar_lea.vmem (!%p297_p8), [#allocation5], %s619_s10  ;;  %s336_s27 = scalar_lea.vmem (!%p297_p8), [#allocation6], %s1172_s11 }
  0x4f   : > { %p622_p12 = scmp.ne.s32.totalorder (!%p297_p8), %s973_s24, 0 }
  0x52   : > { %s338_s14 = scalar_select %p337_p9, %s981_s26, 1 }
  0x53   : > { %s340_s6 = scalar_select %p339_p10, %s973_s24, 2 }
  0x54   : > { %s747_s15 = smul.u32 3, %s338_s14  ;;  %v1000_v16 = vmov (!%p622_p12), 0.0  }
  0x55   : > { %s1180_s18 = scalar_select %p346_p11, %s977_s25, 1 }
  0x56   : > { %s342_s19 = sadd.s32 %s747_s15, %s340_s6  ;;  %352 = sbr.rel (%p622_p12) target bundleno = 93 (0x5d), region = 77  ;;  %353 = vst [vmem:[#allocation2] sm:$0xff] (!%p622_p12), %v1000_v16 }
  0x57   : > { %s621_s12 = sshll.u32 %s342_s19, 3  ;;  %s348_s22 = scalar_lea.vmem %s1282_s3, %s1180_s18 }
  0x58   : > { %s1189_s9 = scalar_lea.vmem %s1280_s1, %s621_s12 }
  0x5d PF: > { %v633_v17 = vld [vmem:[%s1191_s28] sm:$0xff]   ;;  %v1001_v18 = vmov 0.0|0.0   ;;  %vm1002_vm0 = vmmov 0   ;;  %v1003_v19 = vmov 0.0   ;;  %v664_v20 = vld [vmem:[%s1191_s28 + $0x8] sm:$0xff]   ;;  %v665_v21 = vld [vmem:[%s1191_s28 + $0x10] sm:$0xff]  }
  0x5e   : > { %723 = vmatprep.subr.bf16.mxu0 %v1001_v18  ;;  %720 = vmatprep.mubr.msk.f32.mxu0 %vm1002_vm0, %v1003_v19  ;;  %v666_v22 = vld [vmem:[%s1191_s28 + $0x18] sm:$0xff]   ;;  %v667_v23 = vld [vmem:[%s1191_s28 + $0x20] sm:$0xff]   ;;  %s354_s2 = sld [smem:[#allocation4]]  ;;  %v668_v24 = vld [vmem:[%s1191_s28 + $0x28] sm:$0xff]   ;;  %p623_p13 = scmp.ne.s32.totalorder %s973_s24, 2 }
  0x5f   : > { %725 = vmatpush3.bf16.msra.mxu0 %v633_v17  ;;  %v669_v25 = vld [vmem:[%s1191_s28 + $0x30] sm:$0xff]   ;;  %v355_v26 = vld [vmem:[%s1189_s9] sm:$0xff]  ;;  %s624_s29 = sld [smem:[#allocation4 + $0x1]] (!%p623_p13) }
  0x60   : > { %726 = vmatprep.subr.bf16.mxu0 %v1001_v18  ;;  %v670_v28 = vld [vmem:[%s1191_s28 + $0x38] sm:$0xff]  }
  0x61   : > { %v358_v30 = vld [vmem:[#allocation2] sm:$0xff] }
  0x62   : > { %v625_v35 = vld [vmem:[%s348_s22] ss:$0 sm:$0xff] (!%p623_p13) }
  0x63   : > { %728 = vmatpush3.bf16.msra.mxu0 %v664_v20 }
  0x64   : > { %729 = vmatprep.subr.bf16.mxu0 %v1001_v18  ;;  %v356_v27 = vstv %s354_s2 }
  0x65   : > { %v357_v29 = vmul.f32 %v356_v27, %v355_v26  ;;  %v478_v38 = vstv (!%p623_p13), %s624_s29 }
  0x67   : > { %731 = vmatpush3.bf16.msra.mxu0 %v665_v21 }
  0x68   : > { %732 = vmatprep.subr.bf16.mxu0 %v1001_v18 }
  0x6b   : > { %734 = vmatpush3.bf16.msra.mxu0 %v666_v22 }
  0x6c   : > { %735 = vmatprep.subr.bf16.mxu0 %v1001_v18 }
  0x6f   : > { %737 = vmatpush3.bf16.msra.mxu0 %v667_v23 }
  0x70   : > { %738 = vmatprep.subr.bf16.mxu0 %v1001_v18 }
  0x73   : > { %740 = vmatpush3.bf16.msra.mxu0 %v668_v24 }
  0x74   : > { %741 = vmatprep.subr.bf16.mxu0 %v1001_v18 }
  0x77   : > { %743 = vmatpush3.bf16.msra.mxu0 %v669_v25 }
  0x78   : > { %744 = vmatprep.subr.bf16.mxu0 %v1001_v18 }
  0x7b   : > { %746 = vmatpush3.bf16.msra.mxu0 %v670_v28 }
  0x7e   : > { %721 = vmatmul.mubr.f32.vlgmr.msra.gmra.mrb[0].mxu0 %v357_v29 }
 0x14e   : > { %466 = sbr.rel (%p623_p13) target bundleno = 355 (0x163), region = 81 }
 0x151   : > { %v457_v31 = vpop.f32.mrb[0].mxu0 }
 0x152   : > { %v461_v32 = vadd.f32 %v457_v31, %v358_v30  ;;  %v722_v33 = vpop.f32.mrb[1].mxu0 }
 0x154   : > { %462 = vst [vmem:[#allocation2] sm:$0xff] %v461_v32 }
 0x15b   : > { %v468_v34 = vld [vmem:[#allocation2] sm:$0xff] }
 0x15c   : > { %v476_v36 = vadd.f32 %v625_v35, %v468_v34 }
 0x15e   : > { %v748_v37 = vround.rtne.f32 %v476_v36 }
 0x160   : > { %v479_v39 = vmul.f32 %v748_v37, %v478_v38 }
 0x162   : > { %480 = vst [vmem:[%s336_s27] sm:$0xff] %v479_v39 }
 0x163 PF: > { %s627_s24 = sshll.u32 %s981_s26, 1  ;;  %s497_s10 = sshll.u32 %s336_s27, 4  ;;  %s1216_s10 = int_to_ptr.vmem [resolvable:$true] %s497_s10 }
 0x164   : > { %s493_s28 = sadd.s32 %s977_s25, %s627_s24  ;;  %s1302_s19 = sand.u32 1, %s957_s21  }
 0x165   : > { %s628_s14 = sshll.u32 %s493_s28, 7  ;;  %s482_s12 = scalar_lea.sflag [#allocation7], %s1302_s19 }
 0x166   : > { %s495_s18 = scalar_lea.hbm %s1283_s4, %s628_s14  ;;  %s869_s22 = scalar_lea.vmem %s1216_s10, 128 }
 0x167   : > { %p870_p1 = scmp.ne.s32.totalorder %s1216_s10, %s869_s22  ;;  %s1004_s25 = smov [#allocation6]  }
 0x168   : > { %s873_s26 = sshll.u32 %s1004_s25, 4  ;;  %s874_s26 = int_to_ptr.vmem [resolvable:$false] %s873_s26 }
 0x169   : > { %p871_p2 = pnand %p870_p1, %p1119_p0  ;;  %s875_s27 = scalar_lea.vmem %s874_s26, 256 }
 0x16a   : > { %p876_p5 = scmp.lt.s32.totalorder %s1216_s10, %s874_s26  ;;  %p877_p6 = scmp.lt.s32.totalorder %s875_s27, %s869_s22 }
 0x16b   : > { %p872_p3 = pneg %p871_p2 }
 0x16c   : > { %p878_p7 = por %p877_p6, %p876_p5 }
 0x16e   : > { %p879_p8 = pnand %p878_p7, %p872_p3 }
 0x170   : > { %882 = shalt.err (!%p879_p8)
}
 0x171   : > { %s883_s11 = scalar_lea.hbm %s495_s18, 128  ;;  %s887_s29 = scalar_lea.hbm %s1283_s4, 512 }
 0x172   : > { %p884_p9 = scmp.ne.s32.totalorder %s495_s18, %s883_s11  ;;  %p888_p12 = scmp.lt.u32.totalorder %s495_s18, %s1283_s4 }
 0x173   : > { %p889_p13 = scmp.lt.u32.totalorder %s887_s29, %s883_s11  ;;  %p891_p2 = scmp.lt.u32.totalorder %s883_s11, %s495_s18 }
 0x174   : > { %p885_p10 = pnand %p884_p9, %p1119_p0 }
 0x175   : > { %p890_p1 = por %p889_p13, %p888_p12 }
 0x176   : > { %p886_p11 = pneg %p885_p10 }
 0x177   : > { %p892_p5 = por %p891_p2, %p890_p1 }
 0x179   : > { %p893_p3 = pnand %p892_p5, %p886_p11 }
 0x17b   : > { %896 = shalt.err (!%p893_p3)
}
 0x17c   : > { %749 = dma.vmem_to_hbm [thread:$0]  (%p1119_p0), %s1216_s10, 128, %s495_s18, %s482_s12  }
 0x17d PF: > { %p755_p6 = scmp.ge.s32.totalorder %s997_s30, 2  ;;  %s509_s24 = sand.u32 1, %s953_s20  }
 0x17e   : > { %s510_s28 = scalar_lea.sflag [#allocation7], %s509_s24 }
 0x17f   : > { %p752_p7 = pnand %p755_p6, %p1132_p4 }
 0x181   : > { %948 = dma.done.wait (!%p752_p7), %s510_s28, 128  }
 0x182   : > { %950 = vsyncadd (!%p752_p7), %s510_s28, 4294967168  ;;  %s23_s30 = sadd.s32 1, %s997_s30   ;;  %s1303_s24 = sld [smem:[#allocation10_spill]] }
 0x183   : > { %p20_p8 = scmp.ge.s32.totalorder %s23_s30, 14   ;;  %s1304_s25 = sld [smem:[#allocation11_spill]] }
 0x184   : > { %s1305_s26 = sld [smem:[#allocation12_spill]]  ;;  %s1306_s27 = sld [smem:[#allocation13_spill]] }
 0x185   : > { %s1307_s28 = sld [smem:[#allocation14_spill]]  ;;  %s1308_s29 = sld [smem:[#allocation15_spill]] }
 0x186   : > { %s1309_s20 = smov %s957_s21  ;;  %s1310_s21 = smov %s961_s0 }
 0x187   : > { %s1311_s0 = smov %s1137_s5  ;;  %s1312_s22 = smov %s969_s23 }
 0x188   : > { %s1313_s23 = smov %s1126_s17  ;;  %22 = sbr.rel (!%p20_p8) target bundleno = 22 (0x16), region = 127 }
 0x18f   :  { %515 = vsyncpa [#allocation7], 1 }
 0x190   :  { %517 = vsyncpa [#allocation7 + $0x1], 1 }

</bundles_post_ra>
